<compile_context>
chip_gen: v7x
topology: tpu7x:2x2x1
jax: 0.10.0
libtpu: 0.0.40
codegen_flags: <defaults>
</compile_context>

<pallas_src>
import functools

import jax
import jax.numpy as jnp
from jax.experimental import pallas as pl
from jax.experimental.pallas import tpu as pltpu

LANE = 128              # vreg lane width: hidden/output dims padded to this
BATCH_TILE_ALIGN = 16   # bf16 packs 16 sublanes per vreg


def _round_up(x: int, m: int) -> int:
    return (x + m - 1) // m * m


def _fused_mlp_kernel(x_ref, w1_ref, w2_ref, w3_ref, b_ref, o_ref):
    """One batch tile of sigmoid(sigmoid(x@W1+b1)@W2+b2)@W3+b3.

    x_ref : (TB, n_in)  original dtype (cast to bf16 here, hidden under matmuls)
    w*_ref: bf16, zero-padded to lane multiples on hidden/output dims
    b_ref : (8, P) f32, rows 0/1/2 hold b1/b2/b3
    o_ref : (TB, OP) bf16 (lane-dense writeback)
    """
    hp = w1_ref.shape[1]
    op = w3_ref.shape[1]

    # In-kernel bf16 cast instead of a padded bf16 copy of x in HBM.
    x = x_ref[...].astype(jnp.bfloat16)

    b1 = b_ref[0:1, :hp]
    b2 = b_ref[1:2, :hp]
    b3 = b_ref[2:3, :op]

    def sigmoid(v):
        # == jax.nn.sigmoid(v); tanh form costs 1 EUP op/element instead of
        # exp + divide (~2), and the mul/adds ride free VPU slots.
        return 0.5 * jnp.tanh(0.5 * v) + 0.5

    h = jnp.dot(x, w1_ref[...], preferred_element_type=jnp.float32) + b1
    h = sigmoid(h).astype(jnp.bfloat16)
    h = jnp.dot(h, w2_ref[...], preferred_element_type=jnp.float32) + b2
    h = sigmoid(h).astype(jnp.bfloat16)
    y = jnp.dot(h, w3_ref[...], preferred_element_type=jnp.float32) + b3
    o_ref[...] = y.astype(o_ref.dtype)


def prepare_params(w1, b1, w2, b2, w3, b3):
    """One-time pad + bf16 cast of the weights (hoisted out of the per-call path).

    Weights are stored (in, out) so the kernel computes x @ W (== torch x @ W.T).
    Hidden/output dims are zero-padded to multiples of 128 (lane-dense MXU tiles);
    W1's input dim is left unpadded because x is fed at full feature extent.
    NOTE: the zero pad is what makes padded hidden lanes exact (sigmoid(0)=0.5
    only ever multiplies zero-padded weight rows) -- do not pass pre-padded
    weights with garbage in the pad rows.
    """
    n_in, n_hidden = w1.shape
    assert w2.shape == (n_hidden, n_hidden)
    assert w3.shape[0] == n_hidden
    n_out = w3.shape[1]

    hp = _round_up(n_hidden, LANE)
    op = _round_up(n_out, LANE)
    p = max(hp, op)

    bf16, f32 = jnp.bfloat16, jnp.float32
    w1p = jnp.zeros((n_in, hp), bf16).at[:, :n_hidden].set(w1.astype(bf16))
    w2p = jnp.zeros((hp, hp), bf16).at[:n_hidden, :n_hidden].set(w2.astype(bf16))
    w3p = jnp.zeros((hp, op), bf16).at[:n_hidden, :n_out].set(w3.astype(bf16))

    # The three tiny biases packed into a single (8, P) f32 block -> one DMA.
    b_all = jnp.zeros((8, p), f32)
    b_all = b_all.at[0, :n_hidden].set(b1.astype(f32))
    b_all = b_all.at[1, :n_hidden].set(b2.astype(f32))
    b_all = b_all.at[2, :n_out].set(b3.astype(f32))

    return w1p, w2p, w3p, b_all, n_out


@functools.partial(jax.jit, static_argnames=("n_out", "block_batch"))
def _mlp_forward_padded(x, w1p, w2p, w3p, b_all, *, n_out, block_batch):
    B, n_in = x.shape
    hp = w1p.shape[1]
    op = w3p.shape[1]
    p = b_all.shape[1]

    # Balanced batch tiling: near-equal tiles (tail pad < tb rows), rounded to a
    # multiple of 16.  Large tiles amortize the ~0.35us per-grid-step overhead;
    # >= 2 tiles (when B is big enough) keeps both v7x TensorCores busy.
    num_tiles = -(-B // block_batch)
    if B >= 256:
        num_tiles = max(num_tiles, 2)
    tb = _round_up(-(-B // num_tiles), BATCH_TILE_ALIGN)
    bp = _round_up(B, tb)
    grid_n = bp // tb

    # Only batch rows are padded; x's feature dim is fed at full (unpadded) extent.
    xp = x if bp == B else jnp.pad(x, ((0, bp - B), (0, 0)))

    # Constant-index weight blocks stay VMEM-resident across grid steps; when big
    # (large n_hidden) double-buffering them only burns VMEM, so single-buffer.
    # (For hp >~ 2-3K a K-tiled "arbitrary" grid axis with an f32 accumulator
    # scratch would be needed instead of holding full weights resident.)
    weight_bytes = (w1p.size + w2p.size + w3p.size) * w1p.dtype.itemsize
    single_buffer_w = weight_bytes > (4 << 20)

    def w_spec(shape):
        if single_buffer_w:
            return pl.BlockSpec(shape, lambda i: (0, 0), pipeline_mode=pl.Buffered(1))
        return pl.BlockSpec(shape, lambda i: (0, 0))

    flops = 2 * bp * (n_in * hp + hp * hp + hp * op)
    transcendentals = 2 * bp * hp  # two tanh activation layers
    bytes_accessed = (xp.size * xp.dtype.itemsize + weight_bytes
                      + b_all.size * b_all.dtype.itemsize + bp * op * 2)

    w_buf = 1 if single_buffer_w else 2
    vmem_needed = (2 * tb * n_in * xp.dtype.itemsize   # x tiles (double-buffered)
                   + 2 * tb * op * 2                   # bf16 out tiles
                   + 2 * 8 * p * 4                     # bias block
                   + w_buf * weight_bytes              # resident weights
                   + 4 * tb * hp * 4)                  # intermediate-activation slack
    vmem_limit = int(min(max(vmem_needed + (2 << 20), 32 << 20), 100 << 20))

    out = pl.pallas_call(
        _fused_mlp_kernel,
        out_shape=jax.ShapeDtypeStruct((bp, op), jnp.bfloat16),  # halve writeback HBM
        grid=(grid_n,),
        in_specs=[
            pl.BlockSpec((tb, n_in), lambda i: (i, 0)),  # x: batch-tiled, full features
            w_spec((n_in, hp)),                          # weights: VMEM-resident
            w_spec((hp, hp)),
            w_spec((hp, op)),
            pl.BlockSpec((8, p), lambda i: (0, 0)),      # packed biases
        ],
        out_specs=pl.BlockSpec((tb, op), lambda i: (i, 0)),
        compiler_params=pltpu.CompilerParams(
            dimension_semantics=("parallel",),           # batch tiles independent
            vmem_limit_bytes=vmem_limit,
        ),
        cost_estimate=pl.CostEstimate(
            flops=flops,
            transcendentals=transcendentals,
            bytes_accessed=bytes_accessed,
        ),
    )(xp, w1p, w2p, w3p, b_all)

    return out[:B, :n_out].astype(x.dtype)


def mlp_forward(x, params, *, block_batch=1024):
    """x: (B, n_input); params from prepare_params(). Returns (B, n_output) in x.dtype."""
    w1p, w2p, w3p, b_all, n_out = params
    return _mlp_forward_padded(x, w1p, w2p, w3p, b_all,
                               n_out=n_out, block_batch=block_batch)


def _init_linear(key, fan_in, fan_out, dtype=jnp.float32):
    # Mimic torch.nn.Linear default init: U(-1/sqrt(fan_in), 1/sqrt(fan_in)).
    kw, kb = jax.random.split(key)
    bound = 1.0 / jnp.sqrt(jnp.asarray(fan_in, dtype))
    # Stored as (in, out) so the kernel computes x @ W directly (== torch x @ W.T).
    w = jax.random.uniform(kw, (fan_in, fan_out), dtype, -bound, bound)
    b = jax.random.uniform(kb, (fan_out,), dtype, -bound, bound)
    return w, b


if __name__ == "__main__":
    key = jax.random.PRNGKey(0)
    k_x, k1, k2, k3 = jax.random.split(key, 4)

    batch, n_input, n_hidden, n_output = 8, 16, 32, 8

    x = jax.random.normal(k_x, (batch, n_input), jnp.float32)
    w1, b1 = _init_linear(k1, n_input, n_hidden)
    w2, b2 = _init_linear(k2, n_hidden, n_hidden)
    w3, b3 = _init_linear(k3, n_hidden, n_output)

    params = prepare_params(w1, b1, w2, b2, w3, b3)  # one-time pad + bf16 cast
    y = mlp_forward(x, params)
    y = jax.block_until_ready(y)

    # Pure-JAX reference emulating the kernel's bf16-operand / f32-accumulate /
    # bf16-output path (the kernel does NOT numerically match a pure-f32 torch
    # Network by design; tolerance documents the bf16 rounding).
    def _bf(a):
        return a.astype(jnp.bfloat16).astype(jnp.float32)

    h1 = jax.nn.sigmoid(_bf(x) @ _bf(w1) + b1)
    h2 = jax.nn.sigmoid(_bf(h1) @ _bf(w2) + b2)
    y_ref = _bf(_bf(h2) @ _bf(w3) + b3)

    assert y.shape == (batch, n_output)
    max_err = float(jnp.max(jnp.abs(y - y_ref)))
    assert jnp.allclose(y, y_ref, atol=1e-2, rtol=1e-2), max_err

    print("KERNEL_OK")
</pallas_src>

<mosaic_0001>
module attributes {stable_mosaic.version = 11 : i64} {
  func.func @_fused_mlp_kernel(%arg0: i32, %arg1: memref<16x16xf32, #tpu.memory_space<vmem>>, %arg2: memref<16x128xbf16, #tpu.memory_space<vmem>>, %arg3: memref<128x128xbf16, #tpu.memory_space<vmem>>, %arg4: memref<128x128xbf16, #tpu.memory_space<vmem>>, %arg5: memref<8x128xf32, #tpu.memory_space<vmem>>, %arg6: memref<16x128xbf16, #tpu.memory_space<vmem>>) attributes {dimension_semantics = [#tpu.dimension_semantics<parallel>], iteration_bounds = array<i64: 1>, scalar_prefetch = 0 : i64, scratch_operands = 0 : i64, tpu.core_type = #tpu.core_type<tc>, window_params = [{transform_indices = @transform_0, window_bounds = array<i64: 16, 16>}, {pipeline_mode = #tpu.pipeline_mode<synchronous>, transform_indices = @transform_1, window_bounds = array<i64: 16, 128>}, {pipeline_mode = #tpu.pipeline_mode<synchronous>, transform_indices = @transform_2, window_bounds = array<i64: 128, 128>}, {pipeline_mode = #tpu.pipeline_mode<synchronous>, transform_indices = @transform_3, window_bounds = array<i64: 128, 128>}, {pipeline_mode = #tpu.pipeline_mode<synchronous>, transform_indices = @transform_4, window_bounds = array<i64: 8, 128>}, {transform_indices = @transform_5, window_bounds = array<i64: 16, 128>}]} {
    %c0 = arith.constant 0 : index
    %c0_0 = arith.constant 0 : index
    %0 = vector.load %arg1[%c0, %c0_0] : memref<16x16xf32, #tpu.memory_space<vmem>>, vector<16x16xf32>
    %1 = arith.truncf %0 : vector<16x16xf32> to vector<16x16xbf16>
    %c0_1 = arith.constant 0 : index
    %c0_2 = arith.constant 0 : index
    %2 = vector.load %arg5[%c0_1, %c0_2] : memref<8x128xf32, #tpu.memory_space<vmem>>, vector<1x128xf32>
    %c1 = arith.constant 1 : index
    %c0_3 = arith.constant 0 : index
    %3 = vector.load %arg5[%c1, %c0_3] : memref<8x128xf32, #tpu.memory_space<vmem>>, vector<1x128xf32>
    %c2 = arith.constant 2 : index
    %c0_4 = arith.constant 0 : index
    %4 = vector.load %arg5[%c2, %c0_4] : memref<8x128xf32, #tpu.memory_space<vmem>>, vector<1x128xf32>
    %c0_5 = arith.constant 0 : index
    %c0_6 = arith.constant 0 : index
    %5 = vector.load %arg2[%c0_5, %c0_6] : memref<16x128xbf16, #tpu.memory_space<vmem>>, vector<16x128xbf16>
    %cst = arith.constant dense<0.000000e+00> : vector<16x128xf32>
    %6 = tpu.matmul %1, %5, %cst {dimension_numbers = #tpu.dot_dimension_numbers<[1], [0], [0], [1], [0, 0, 1, 1], [], []>} : vector<16x16xbf16>, vector<16x128xbf16>, vector<16x128xf32> -> vector<16x128xf32>
    %7 = vector.broadcast %2 : vector<1x128xf32> to vector<16x128xf32>
    %8 = arith.addf %6, %7 : vector<16x128xf32>
    %cst_7 = arith.constant 5.000000e-01 : f32
    %9 = vector.broadcast %cst_7 : f32 to vector<16x128xf32>
    %10 = arith.mulf %9, %8 : vector<16x128xf32>
    %11 = math.tanh %10 : vector<16x128xf32>
    %cst_8 = arith.constant 5.000000e-01 : f32
    %12 = vector.broadcast %cst_8 : f32 to vector<16x128xf32>
    %13 = arith.mulf %12, %11 : vector<16x128xf32>
    %cst_9 = arith.constant 5.000000e-01 : f32
    %14 = vector.broadcast %cst_9 : f32 to vector<16x128xf32>
    %15 = arith.addf %13, %14 : vector<16x128xf32>
    %16 = arith.truncf %15 : vector<16x128xf32> to vector<16x128xbf16>
    %c0_10 = arith.constant 0 : index
    %c0_11 = arith.constant 0 : index
    %17 = vector.load %arg3[%c0_10, %c0_11] : memref<128x128xbf16, #tpu.memory_space<vmem>>, vector<128x128xbf16>
    %cst_12 = arith.constant dense<0.000000e+00> : vector<16x128xf32>
    %18 = tpu.matmul %16, %17, %cst_12 {dimension_numbers = #tpu.dot_dimension_numbers<[1], [0], [0], [1], [0, 0, 1, 1], [], []>} : vector<16x128xbf16>, vector<128x128xbf16>, vector<16x128xf32> -> vector<16x128xf32>
    %19 = vector.broadcast %3 : vector<1x128xf32> to vector<16x128xf32>
    %20 = arith.addf %18, %19 : vector<16x128xf32>
    %cst_13 = arith.constant 5.000000e-01 : f32
    %21 = vector.broadcast %cst_13 : f32 to vector<16x128xf32>
    %22 = arith.mulf %21, %20 : vector<16x128xf32>
    %23 = math.tanh %22 : vector<16x128xf32>
    %cst_14 = arith.constant 5.000000e-01 : f32
    %24 = vector.broadcast %cst_14 : f32 to vector<16x128xf32>
    %25 = arith.mulf %24, %23 : vector<16x128xf32>
    %cst_15 = arith.constant 5.000000e-01 : f32
    %26 = vector.broadcast %cst_15 : f32 to vector<16x128xf32>
    %27 = arith.addf %25, %26 : vector<16x128xf32>
    %28 = arith.truncf %27 : vector<16x128xf32> to vector<16x128xbf16>
    %c0_16 = arith.constant 0 : index
    %c0_17 = arith.constant 0 : index
    %29 = vector.load %arg4[%c0_16, %c0_17] : memref<128x128xbf16, #tpu.memory_space<vmem>>, vector<128x128xbf16>
    %cst_18 = arith.constant dense<0.000000e+00> : vector<16x128xf32>
    %30 = tpu.matmul %28, %29, %cst_18 {dimension_numbers = #tpu.dot_dimension_numbers<[1], [0], [0], [1], [0, 0, 1, 1], [], []>} : vector<16x128xbf16>, vector<128x128xbf16>, vector<16x128xf32> -> vector<16x128xf32>
    %31 = vector.broadcast %4 : vector<1x128xf32> to vector<16x128xf32>
    %32 = arith.addf %30, %31 : vector<16x128xf32>
    %33 = arith.truncf %32 : vector<16x128xf32> to vector<16x128xbf16>
    %c0_19 = arith.constant 0 : index
    %c0_20 = arith.constant 0 : index
    %34 = vector.load %arg6[%c0_19, %c0_20] : memref<16x128xbf16, #tpu.memory_space<vmem>>, vector<16x128xbf16>
    tpu.vector_store %arg6[%c0_19, %c0_20], %33 {strides = array<i32>} : memref<16x128xbf16, #tpu.memory_space<vmem>>, vector<16x128xbf16>,
    return
  }
  func.func @transform_0(%arg0: i32) -> (i32, i32) {
    %c0_i32 = arith.constant 0 : i32
    %c0_i32_0 = arith.constant 0 : i32
    return %arg0, %c0_i32 : i32, i32
  }
  func.func @transform_1(%arg0: i32) -> (i32, i32) {
    %c0_i32 = arith.constant 0 : i32
    %c0_i32_0 = arith.constant 0 : i32
    %c0_i32_1 = arith.constant 0 : i32
    return %c0_i32, %c0_i32_0 : i32, i32
  }
  func.func @transform_2(%arg0: i32) -> (i32, i32) {
    %c0_i32 = arith.constant 0 : i32
    %c0_i32_0 = arith.constant 0 : i32
    %c0_i32_1 = arith.constant 0 : i32
    return %c0_i32, %c0_i32_0 : i32, i32
  }
  func.func @transform_3(%arg0: i32) -> (i32, i32) {
    %c0_i32 = arith.constant 0 : i32
    %c0_i32_0 = arith.constant 0 : i32
    %c0_i32_1 = arith.constant 0 : i32
    return %c0_i32, %c0_i32_0 : i32, i32
  }
  func.func @transform_4(%arg0: i32) -> (i32, i32) {
    %c0_i32 = arith.constant 0 : i32
    %c0_i32_0 = arith.constant 0 : i32
    %c0_i32_1 = arith.constant 0 : i32
    return %c0_i32, %c0_i32_0 : i32, i32
  }
  func.func @transform_5(%arg0: i32) -> (i32, i32) {
    %c0_i32 = arith.constant 0 : i32
    %c0_i32_0 = arith.constant 0 : i32
    return %arg0, %c0_i32 : i32, i32
  }
}

</mosaic_0001>

<bundles_post_ra>
// kernel: _mlp_forward_padded.1
= control target key start
LH: loop header
LB: loop body
LE: loop exit
PB: predicated region body
PF: predicated region fallthrough
CT: control target
= control target key end

     0   :  { %10 = vsyncpa [#allocation3], 0  ;;  %s643_s0 = inlined_call_operand.vmem [shape: f32[16,16], index: 0, kind: input, shape index: {}]   ;;  %s644_s1 = inlined_call_operand.vmem [shape: bf16[16,128], index: 1, kind: input, shape index: {}]   ;;  %s645_s2 = inlined_call_operand.hbm [shape: bf16[128,128], index: 2, kind: input, shape index: {}]   ;;  %s646_s3 = inlined_call_operand.hbm [shape: bf16[128,128], index: 3, kind: input, shape index: {}]   ;;  %s647_s4 = inlined_call_operand.vmem [shape: f32[8,128], index: 4, kind: input, shape index: {}]   ;;  %s648_s5 = inlined_call_operand.vmem [shape: bf16[16,128], index: 5, kind: output, shape index: {}]  }
   0x1   :  { %11 = vsyncpa [#allocation5], 0  ;;  %s539_s18 = smov [#allocation2]   ;;  %s491_s22 = scalar_lea.hbm %s645_s2, 1024 }
   0x2   :  { %s21_s19 = sshll.u32 %s539_s18, 4  ;;  %p492_p0 = scmp.ne.s32.totalorder %s645_s2, %s491_s22  ;;  %s22_s19 = int_to_ptr.vmem [resolvable:$true] %s21_s19 }
   0x3   :  { %p495_p1 = scmp.lt.u32.totalorder %s491_s22, %s645_s2 }
   0x5   :  { %p497_p2 = pnand %p495_p1, %p492_p0 }
   0x7   :  { %500 = shalt.err (!%p497_p2)
}
   0x8   :  { %s501_s27 = scalar_lea.vmem %s22_s19, 1024  ;;  %p506_p4 = scmp.lt.s32.totalorder %s22_s19, %s22_s19 }
   0x9   :  { %p502_p3 = scmp.ne.s32.totalorder %s22_s19, %s501_s27  ;;  %p507_p5 = scmp.lt.s32.totalorder %s501_s27, %s501_s27 }
   0xb   :  { %p508_p6 = por %p507_p5, %p506_p4 }
   0xd   :  { %p509_p7 = pnand %p508_p6, %p502_p3 }
   0xf   :  { %512 = shalt.err (!%p509_p7)
}
  0x10   :  { %s540_s28 = smov 64   ;;  %s541_s29 = smov 4  }
  0x11   :  { %27 = dma.hbm_to_vmem [thread:$0]  %s645_s2, 1024, %s22_s19, [#allocation3], %s540_s28, %s540_s28, %s541_s29  }
  0x12   :  { %s542_s7 = smov [#allocation4]   ;;  %s513_s11 = scalar_lea.hbm %s646_s3, 1024 }
  0x13   :  { %s33_s8 = sshll.u32 %s542_s7, 4  ;;  %p514_p8 = scmp.ne.s32.totalorder %s646_s3, %s513_s11  ;;  %s34_s8 = int_to_ptr.vmem [resolvable:$true] %s33_s8 }
  0x14   :  { %p517_p9 = scmp.lt.u32.totalorder %s513_s11, %s646_s3 }
  0x16   :  { %p519_p10 = pnand %p517_p9, %p514_p8 }
  0x18   :  { %522 = shalt.err (!%p519_p10)
}
  0x19   :  { %s523_s16 = scalar_lea.vmem %s34_s8, 1024  ;;  %p528_p12 = scmp.lt.s32.totalorder %s34_s8, %s34_s8 }
  0x1a   :  { %p524_p11 = scmp.ne.s32.totalorder %s34_s8, %s523_s16  ;;  %p529_p13 = scmp.lt.s32.totalorder %s523_s16, %s523_s16 }
  0x1c   :  { %p530_p0 = por %p529_p13, %p528_p12 }
  0x1e   :  { %p531_p1 = pnand %p530_p0, %p524_p11 }
  0x20   :  { %534 = shalt.err (!%p531_p1)
}
  0x21   :  { %39 = dma.hbm_to_vmem [thread:$0]  %s646_s3, 1024, %s34_s8, [#allocation5], %s540_s28, %s540_s28, %s541_s29  }
  0x22   :  { %535 = dma.done.wait [#allocation3], 1024  }
  0x23   :  { %536 = vsyncadd [#allocation3], 4294966272 }
  0x24   :  { %537 = dma.done.wait [#allocation5], 1024  }
  0x25   :  { %538 = vsyncadd [#allocation5], 4294966272  ;;  %v543_v0 = vmov 0.0   ;;  %vm544_vm0 = vmmov 0   ;;  %v466_v1 = vld [vmem:[%s644_s1] sm:$0xff]   ;;  %v50_v3 = vld [vmem:[%s643_s0 + $0x8] sm:$0xff] }
  0x26   :  { %414 = vmatprep.subr.bf16.mxu0 %v543_v0  ;;  %416 = vmatprep.mubr.msk.bf16.mxu0 %vm544_vm0, %v543_v0  ;;  %v49_v2 = vld [vmem:[%s643_s0] sm:$0xff]  ;;  %vm67_vm1 = vcmask 130048   ;;  %v468_v6 = vld [vmem:[#allocation2 + $0x8] sm:$0xff]   ;;  %v469_v7 = vld [vmem:[#allocation2 + $0x10] sm:$0xff]  }
  0x27   :  { %420 = vmatprep.subr.bf16.mxu1 %v543_v0  ;;  %436 = vmatprep.mubr.msk.bf16.mxu1 %vm544_vm0, %v543_v0  ;;  %v51_v4 = vpack.c.bf16 %v50_v3, %v49_v2  ;;  %v467_v5 = vld [vmem:[#allocation2] sm:$0xff]   ;;  %v470_v8 = vld [vmem:[#allocation2 + $0x18] sm:$0xff]   ;;  %v472_v10 = vld [vmem:[#allocation2 + $0x28] sm:$0xff]  }
  0x28   :  { %415 = vmatpush3.bf16.msra.mxu0 %v466_v1  ;;  %421 = vmatpush3.bf16.msra.mxu1 %v467_v5  ;;  %v471_v9 = vld [vmem:[#allocation2 + $0x20] sm:$0xff]   ;;  %v473_v11 = vld [vmem:[#allocation2 + $0x30] sm:$0xff]   ;;  %v474_v12 = vld [vmem:[#allocation2 + $0x38] sm:$0xff]  }
  0x29   :  { %440 = vmatprep.subr.bf16.mxu0 %v543_v0  ;;  %422 = vmatprep.subr.bf16.mxu1 %v543_v0  ;;  %v475_v13 = vld [vmem:[#allocation4] sm:$0xff]   ;;  %v476_v14 = vld [vmem:[#allocation4 + $0x8] sm:$0xff]   ;;  %v477_v31 = vld [vmem:[#allocation4 + $0x10] sm:$0xff]  }
  0x2a   :  { %v364_v15 = vld [vmem:[%s647_s4] ss:$0 sm:$0xff]  ;;  %v478_v32 = vld [vmem:[#allocation4 + $0x18] sm:$0xff]   ;;  %v480_v34 = vld [vmem:[#allocation4 + $0x28] sm:$0xff]  }
  0x2b   :  { %417 = vmatmul.mubr.msk.bf16.vlgmr.msra.gmra.mrb[0].mxu0 %vm67_vm1, %v51_v4  ;;  %v479_v33 = vld [vmem:[#allocation4 + $0x20] sm:$0xff]   ;;  %v481_v35 = vld [vmem:[#allocation4 + $0x30] sm:$0xff]   ;;  %v482_v36 = vld [vmem:[#allocation4 + $0x38] sm:$0xff]  }
  0x2c   :  { %456 = vmatprep.mubr.msk.bf16.mxu0 %vm544_vm0, %v543_v0  ;;  %423 = vmatpush3.bf16.msra.mxu1 %v468_v6  ;;  %v367_v37 = vld [vmem:[%s647_s4 + $0x1] ss:$0 sm:$0xff]  ;;  %v376_v53 = vld [vmem:[%s647_s4 + $0x2] ss:$0 sm:$0xff] }
  0x2d   :  { %424 = vmatprep.subr.bf16.mxu1 %v543_v0  ;;  %441 = vmatpush3.bf16.msra.mxu0 %v475_v13 }
  0x2e   :  { %442 = vmatprep.subr.bf16.mxu0 %v543_v0 }
  0x30   :  { %425 = vmatpush3.bf16.msra.mxu1 %v469_v7 }
  0x31   :  { %426 = vmatprep.subr.bf16.mxu1 %v543_v0  ;;  %443 = vmatpush3.bf16.msra.mxu0 %v476_v14 }
  0x32   :  { %444 = vmatprep.subr.bf16.mxu0 %v543_v0 }
  0x34   :  { %427 = vmatpush3.bf16.msra.mxu1 %v470_v8 }
  0x35   :  { %428 = vmatprep.subr.bf16.mxu1 %v543_v0  ;;  %445 = vmatpush3.bf16.msra.mxu0 %v477_v31 }
  0x36   :  { %446 = vmatprep.subr.bf16.mxu0 %v543_v0 }
  0x38   :  { %429 = vmatpush3.bf16.msra.mxu1 %v471_v9 }
  0x39   :  { %430 = vmatprep.subr.bf16.mxu1 %v543_v0  ;;  %447 = vmatpush3.bf16.msra.mxu0 %v478_v32 }
  0x3a   :  { %448 = vmatprep.subr.bf16.mxu0 %v543_v0 }
  0x3c   :  { %431 = vmatpush3.bf16.msra.mxu1 %v472_v10 }
  0x3d   :  { %432 = vmatprep.subr.bf16.mxu1 %v543_v0  ;;  %449 = vmatpush3.bf16.msra.mxu0 %v479_v33 }
  0x3e   :  { %450 = vmatprep.subr.bf16.mxu0 %v543_v0 }
  0x40   :  { %433 = vmatpush3.bf16.msra.mxu1 %v473_v11 }
  0x41   :  { %434 = vmatprep.subr.bf16.mxu1 %v543_v0  ;;  %451 = vmatpush3.bf16.msra.mxu0 %v480_v34 }
  0x42   :  { %452 = vmatprep.subr.bf16.mxu0 %v543_v0 }
  0x44   :  { %435 = vmatpush3.bf16.msra.mxu1 %v474_v12 }
  0x45   :  { %453 = vmatpush3.bf16.msra.mxu0 %v481_v35 }
  0x46   :  { %454 = vmatprep.subr.bf16.mxu0 %v543_v0 }
  0x49   :  { %455 = vmatpush3.bf16.msra.mxu0 %v482_v36 }
  0xfe   :  { %v105_v16 = vpop.f32.mrb[0].mxu0 }
  0xff   :  { %v106_v17 = vadd.f32 %v364_v15, %v105_v16  ;;  %v418_v18 = vpop.f32.mrb[1].mxu0 }
 0x100   :  { %v108_v19 = vpop.f32.mrb[2].mxu0 }
 0x101   :  { %v112_v20 = vmul.f32 0.5, %v106_v17  ;;  %v109_v21 = vadd.f32 %v364_v15, %v108_v19  ;;  %v419_v22 = vpop.f32.mrb[3].mxu0 }
 0x103   :  { %483 = vtanh.f32 %v112_v20  ;;  %v113_v23 = vmul.f32 0.5, %v109_v21 }
 0x105   :  { %485 = vtanh.f32 %v113_v23 }
 0x10d   :  { %v484_v24 = vpop.eup %483 }
 0x10e   :  { %v116_v25 = vmul.f32 0.5, %v484_v24 }
 0x10f   :  { %v486_v26 = vpop.eup %485 }
 0x110   :  { %v117_v27 = vmul.f32 0.5, %v486_v26  ;;  %v118_v28 = vadd.f32 0.5, %v116_v25 }
 0x112   :  { %v119_v29 = vadd.f32 0.5, %v117_v27 }
 0x114   :  { %v120_v30 = vpack.c.bf16 %v119_v29, %v118_v28 }
 0x116   :  { %437 = vmatmul.mubr.bf16.vlgmr.msra.gmra.mrb[0].mxu1 %v120_v30 }
 0x1e9   :  { %v223_v38 = vpop.f32.mrb[0].mxu1 }
 0x1ea   :  { %v224_v39 = vadd.f32 %v367_v37, %v223_v38  ;;  %v438_v40 = vpop.f32.mrb[1].mxu1 }
 0x1eb   :  { %v226_v41 = vpop.f32.mrb[2].mxu1 }
 0x1ec   :  { %v230_v42 = vmul.f32 0.5, %v224_v39  ;;  %v227_v43 = vadd.f32 %v367_v37, %v226_v41  ;;  %v439_v44 = vpop.f32.mrb[3].mxu1 }
 0x1ee   :  { %487 = vtanh.f32 %v230_v42  ;;  %v231_v45 = vmul.f32 0.5, %v227_v43 }
 0x1f0   :  { %489 = vtanh.f32 %v231_v45 }
 0x1f8   :  { %v488_v46 = vpop.eup %487 }
 0x1f9   :  { %v234_v47 = vmul.f32 0.5, %v488_v46 }
 0x1fa   :  { %v490_v48 = vpop.eup %489 }
 0x1fb   :  { %v235_v49 = vmul.f32 0.5, %v490_v48  ;;  %v236_v50 = vadd.f32 0.5, %v234_v47 }
 0x1fd   :  { %v237_v51 = vadd.f32 0.5, %v235_v49 }
 0x1ff   :  { %v238_v52 = vpack.c.bf16 %v237_v51, %v236_v50 }
 0x201   :  { %457 = vmatmul.mubr.bf16.vlgmr.msra.gmra.mrb[4].mxu0 %v238_v52 }
 0x2d4   :  { %v341_v54 = vpop.f32.mrb[4].mxu0 }
 0x2d5   :  { %v458_v55 = vpop.f32.mrb[5].mxu0  ;;  %v342_v57 = vadd.f32 %v376_v53, %v341_v54 }
 0x2d6   :  { %v344_v56 = vpop.f32.mrb[6].mxu0 }
 0x2d7   :  { %v345_v58 = vadd.f32 %v376_v53, %v344_v56  ;;  %v459_v59 = vpop.f32.mrb[7].mxu0 }
 0x2d9   :  { %v392_v60 = vpack.c.bf16 %v345_v58, %v342_v57 }
 0x2db   :  { %393 = vst [vmem:[%s648_s5] sm:$0xff] %v392_v60  }
 0x2dc   :  { %362 = vsyncpa [#allocation3], 1 }
 0x2dd   :  { %363 = vsyncpa [#allocation5], 1 }

</bundles_post_ra>
